<compile_context>
chip_gen: v7x
topology: tpu7x:2x2x1
jax: 0.10.0
libtpu: 0.0.40
codegen_flags: <defaults>
</compile_context>

<pallas_src>
import functools

import jax
import jax.numpy as jnp
from jax.experimental import pallas as pl
from jax.experimental.pallas import tpu as pltpu

_LANE = 128
_SUBLANE = 8


def _round_up(n: int, m: int) -> int:
    return ((n + m - 1) // m) * m


def _finetune_kernel(x_ref, wce_ref, be_ref, wht_ref, bh_ref, out_ref, *,
                     compute_dtype, gelu_dtype):
    """Fused adapter∘encoder∘head for one batch tile — two lane-dense MXU matmuls.

    x_ref   : (TB, C*L)   input tile in its original dtype (cast here, after the DMA)
    wce_ref : (C*L, Dp)   composed adapter⊗encoder weight (Dp = C2*H padded to 128k)
    be_ref  : (1, Dp)     effective encoder bias (adapter bias folded through), f32
    wht_ref : (Dp, NCp)   head weight, transposed + zero-padded
    bh_ref  : (1, NCp)    head bias, f32
    out_ref : (TB, NCp)   padded logits (lane-dense store)
    """
    x = x_ref[...].astype(compute_dtype)
    # adapter + encoder pre-activation in ONE matmul, f32 accumulation.
    pre = jnp.dot(x, wce_ref[...], preferred_element_type=jnp.float32) + be_ref[...]
    e = jax.nn.gelu(pre.astype(gelu_dtype), approximate=True)          # GELU(tanh)
    # head: single (TB, Dp) @ (Dp, NCp) matmul (columns already in torch.cat order).
    logits = jnp.dot(e.astype(compute_dtype), wht_ref[...],
                     preferred_element_type=jnp.float32) + bh_ref[...]
    out_ref[...] = logits.astype(out_ref.dtype)


def prepare_params(wa, ba, we, be, wh, bh, *, compute_dtype=jnp.bfloat16):
    """One-time parameter prep: compose adapter⊗encoder, fold biases, transpose + pad."""
    c2, c = wa.shape
    h, l = we.shape
    nc = wh.shape[0]
    d = c2 * h
    dp = _round_up(d, _LANE)
    ncp = _round_up(nc, _LANE)

    # Composed weight: pre[b, i*H + h] = sum_{c,l} x[b, c*L + l] * wa[i, c] * we[h, l]
    wcomp = jnp.einsum("ic,hl->clih", wa.astype(jnp.float32),
                       we.astype(jnp.float32)).reshape(c * l, d)
    wce_p = jnp.zeros((c * l, dp), jnp.float32).at[:, :d].set(wcomp)

    # Fold the adapter bias through the encoder (exact): be_eff[i,h] = ba[i]*sum_l we[h,l] + be[h]
    be_eff = (ba[:, None] * we.sum(axis=1)[None, :] + be[None, :]).reshape(1, d)
    be_p = jnp.zeros((1, dp), jnp.float32).at[:, :d].set(be_eff)

    # Head: encoder-output column order (i, h) == torch.cat(dim=-1) order, so wh.T is direct.
    wht_p = jnp.zeros((dp, ncp), jnp.float32).at[:d, :nc].set(wh.T)
    bh_p = jnp.zeros((1, ncp), jnp.float32).at[:, :nc].set(bh)

    cd = jnp.dtype(compute_dtype)
    return dict(
        wce_p=wce_p.astype(cd), be_p=be_p,
        wht_p=wht_p.astype(cd), bh_p=bh_p,
        dims=dict(c2=c2, c=c, l=l, h=h, nc=nc, d=d, dp=dp, ncp=ncp),
        compute_dtype=cd,
    )


def _pick_tile_b(b: int, max_tile: int = 256) -> int:
    """Largest sublane-aligned batch tile that still leaves a >=2-step grid when possible."""
    if b <= _SUBLANE or b % _SUBLANE != 0:
        return b                      # full-extent fallback (still a legal BlockSpec)
    divisors = [t for t in range(_SUBLANE, min(max_tile, b) + 1, _SUBLANE) if b % t == 0]
    multi = [t for t in divisors if b // t >= 2]   # keep both v7x TensorCores busy
    pool = multi if multi else divisors
    return max(pool) if pool else b


def _vmem_capacity_bytes() -> int:
    try:
        return int(pltpu.get_tpu_info().vmem_capacity_bytes)
    except Exception:
        return 64 * 2**20             # v7x worst case


def _gelu_dtype(compute_dtype) -> jnp.dtype:
    if jnp.dtype(compute_dtype) == jnp.float32:
        return jnp.dtype(jnp.float32)
    try:
        kind = jax.devices()[0].device_kind.lower()
    except Exception:
        kind = ""
    if ("v6" in kind) or ("v7" in kind) or ("7x" in kind):
        return jnp.dtype(jnp.bfloat16)    # bf16 VPU/EUP on v6e/v7x
    return jnp.dtype(jnp.float32)         # v5e & unknown: f32 elementwise is the safe path


def finetuning_network_forward_prepared(x, params, *, tile_b=None):
    b, c, l = x.shape
    dims = params["dims"]
    assert c == dims["c"] and l == dims["l"], "input shape does not match prepared params"
    dp, ncp, nc = dims["dp"], dims["ncp"], dims["nc"]

    if tile_b is None:
        tile_b = _pick_tile_b(b)
    # TODO(synk): remainder handling for batch sizes not divisible by the chosen tile.
    assert b % tile_b == 0, "batch must be a multiple of the batch tile"
    grid = (b // tile_b,)

    # Free row-major reshape; the dtype cast happens inside the kernel, after the DMA.
    x2 = x.reshape(b, c * l)

    # VMEM budget: 2 buffers per input (Pallas default double-buffering), in/out tiles,
    # in-kernel intermediates, 2x headroom; cap at ~80% of the physical/scoped capacity.
    weight_bytes = sum(int(params[k].size) * jnp.dtype(params[k].dtype).itemsize
                       for k in ("wce_p", "be_p", "wht_p", "bh_p"))
    need = (2 * weight_bytes
            + 2 * tile_b * c * l * x.dtype.itemsize     # double-buffered input tile
            + 2 * tile_b * ncp * 4                      # double-buffered output tile
            + 3 * tile_b * dp * 4)                      # pre / gelu / cast intermediates
    vmem_limit = int(min(int(0.8 * _vmem_capacity_bytes()), max(2 * need, 16 * 2**20)))

    kernel = functools.partial(
        _finetune_kernel,
        compute_dtype=params["compute_dtype"],
        gelu_dtype=_gelu_dtype(params["compute_dtype"]),
    )

    out_p = pl.pallas_call(
        kernel,
        out_shape=jax.ShapeDtypeStruct((b, ncp), jnp.float32),
        grid=grid,
        in_specs=[
            pl.BlockSpec((tile_b, c * l), lambda g: (g, 0)),   # x tile (streams)
            pl.BlockSpec((c * l, dp), lambda g: (0, 0)),       # composed weight (resident)
            pl.BlockSpec((1, dp), lambda g: (0, 0)),           # effective encoder bias
            pl.BlockSpec((dp, ncp), lambda g: (0, 0)),         # head weight (resident)
            pl.BlockSpec((1, ncp), lambda g: (0, 0)),          # head bias
        ],
        out_specs=pl.BlockSpec((tile_b, ncp), lambda g: (g, 0)),   # lane-dense store
        compiler_params=pltpu.CompilerParams(
            dimension_semantics=("parallel",),   # shard batch tiles across TCs (v7x megacore)
            vmem_limit_bytes=vmem_limit,
        ),
    )(x2, params["wce_p"], params["be_p"], params["wht_p"], params["bh_p"])

    return out_p[:, :nc]                          # drop lane padding


def finetuning_network_forward(x, wa, ba, we, be, wh, bh, *, tile_b=None,
                               compute_dtype=jnp.bfloat16):
    """Convenience wrapper: prepares params (one-time cost) and runs the fused forward."""
    params = prepare_params(wa, ba, we, be, wh, bh, compute_dtype=compute_dtype)
    return finetuning_network_forward_prepared(x, params, tile_b=tile_b)


def _reference_forward(x, wa, ba, we, be, wh, bh):
    """Pure-JAX reference mirroring FineTuningNetwork.forward (adapter branch)."""
    a = jnp.einsum("oc,bcl->bol", wa, x) + ba[None, :, None]               # adapter (Conv1d k=1)
    embs = [jax.nn.gelu(a[:, i, :] @ we.T + be, approximate=True)
            for i in range(wa.shape[0])]                                   # per-channel encoder
    emb = jnp.concatenate(embs, axis=-1)                                   # torch.cat(dim=-1)
    return emb @ wh.T + bh                                                 # head


if __name__ == "__main__":
    # Small shapes consistent with the module's (n_samples, n_channels, seq_len) contract.
    # B=16 gives a 2-step "parallel" grid with a sublane-aligned tile of 8.
    B, C, L = 16, 4, 16       # batch, input channels, seq_len
    C2, H, NC = 3, 32, 5      # adapter output channels, encoder hidden dim, n_classes

    key = jax.random.PRNGKey(0)
    kx, kwa, kba, kwe, kbe, kwh, kbh = jax.random.split(key, 7)

    x  = jax.random.normal(kx,  (B, C, L), dtype=jnp.float32)
    wa = jax.random.normal(kwa, (C2, C),   dtype=jnp.float32) * 0.2   # Conv1d(C, C2, 1).weight[..., 0]
    ba = jax.random.normal(kba, (C2,),     dtype=jnp.float32) * 0.1
    we = jax.random.normal(kwe, (H, L),    dtype=jnp.float32) * 0.2   # encoder Linear(L, H)
    be = jax.random.normal(kbe, (H,),      dtype=jnp.float32) * 0.1
    wh = jax.random.normal(kwh, (NC, C2 * H), dtype=jnp.float32) * 0.2  # head Linear(C2*H, NC)
    bh = jax.random.normal(kbh, (NC,),     dtype=jnp.float32) * 0.1

    ref = _reference_forward(x, wa, ba, we, be, wh, bh)

    # f32 operands: tight tolerance.
    out_f32 = finetuning_network_forward(x, wa, ba, we, be, wh, bh,
                                         compute_dtype=jnp.float32)
    out_f32 = jax.block_until_ready(out_f32)
    assert out_f32.shape == (B, NC)
    err_f32 = float(jnp.max(jnp.abs(out_f32 - ref)))
    assert jnp.allclose(out_f32, ref, atol=2e-4, rtol=2e-4), \
        f"f32 mismatch vs. reference (max abs err {err_f32})"

    # bf16 operands (default fast path): f32 accumulation, looser tolerance.
    out_bf16 = finetuning_network_forward(x, wa, ba, we, be, wh, bh,
                                          compute_dtype=jnp.bfloat16)
    out_bf16 = jax.block_until_ready(out_bf16)
    assert out_bf16.shape == (B, NC)
    err_bf16 = float(jnp.max(jnp.abs(out_bf16 - ref)))
    assert jnp.allclose(out_bf16, ref, atol=5e-2, rtol=5e-2), \
        f"bf16 mismatch vs. reference (max abs err {err_bf16})"

    print("KERNEL_OK")
</pallas_src>

<mosaic_0001>
module attributes {stable_mosaic.version = 11 : i64} {
  func.func @_finetune_kernel(%arg0: i32, %arg1: memref<8x64xf32, #tpu.memory_space<vmem>>, %arg2: memref<64x128xf32, #tpu.memory_space<vmem>>, %arg3: memref<1x128xf32, #tpu.memory_space<vmem>>, %arg4: memref<128x128xf32, #tpu.memory_space<vmem>>, %arg5: memref<1x128xf32, #tpu.memory_space<vmem>>, %arg6: memref<8x128xf32, #tpu.memory_space<vmem>>) attributes {dimension_semantics = [#tpu.dimension_semantics<parallel>], iteration_bounds = array<i64: 2>, scalar_prefetch = 0 : i64, scratch_operands = 0 : i64, tpu.core_type = #tpu.core_type<tc>, window_params = [{transform_indices = @transform_0, window_bounds = array<i64: 8, 64>}, {pipeline_mode = #tpu.pipeline_mode<synchronous>, transform_indices = @transform_1, window_bounds = array<i64: 64, 128>}, {pipeline_mode = #tpu.pipeline_mode<synchronous>, transform_indices = @transform_2, window_bounds = array<i64: 1, 128>}, {pipeline_mode = #tpu.pipeline_mode<synchronous>, transform_indices = @transform_3, window_bounds = array<i64: 128, 128>}, {pipeline_mode = #tpu.pipeline_mode<synchronous>, transform_indices = @transform_4, window_bounds = array<i64: 1, 128>}, {transform_indices = @transform_5, window_bounds = array<i64: 8, 128>}]} {
    %c0 = arith.constant 0 : index
    %c0_0 = arith.constant 0 : index
    %0 = vector.load %arg1[%c0, %c0_0] : memref<8x64xf32, #tpu.memory_space<vmem>>, vector<8x64xf32>
    %c0_1 = arith.constant 0 : index
    %c0_2 = arith.constant 0 : index
    %1 = vector.load %arg2[%c0_1, %c0_2] : memref<64x128xf32, #tpu.memory_space<vmem>>, vector<64x128xf32>
    %cst = arith.constant dense<0.000000e+00> : vector<8x128xf32>
    %2 = tpu.matmul %0, %1, %cst {dimension_numbers = #tpu.dot_dimension_numbers<[1], [0], [0], [1], [0, 0, 1, 1], [], []>} : vector<8x64xf32>, vector<64x128xf32>, vector<8x128xf32> -> vector<8x128xf32>
    %c0_3 = arith.constant 0 : index
    %c0_4 = arith.constant 0 : index
    %3 = vector.load %arg3[%c0_3, %c0_4] : memref<1x128xf32, #tpu.memory_space<vmem>>, vector<1x128xf32>
    %4 = vector.broadcast %3 : vector<1x128xf32> to vector<8x128xf32>
    %5 = arith.addf %2, %4 : vector<8x128xf32>
    %6 = arith.mulf %5, %5 : vector<8x128xf32>
    %7 = arith.mulf %5, %6 : vector<8x128xf32>
    %cst_5 = arith.constant 4.471500e-02 : f32
    %8 = vector.broadcast %cst_5 : f32 to vector<8x128xf32>
    %9 = arith.mulf %8, %7 : vector<8x128xf32>
    %10 = arith.addf %5, %9 : vector<8x128xf32>
    %cst_6 = arith.constant 0.797884583 : f32
    %11 = vector.broadcast %cst_6 : f32 to vector<8x128xf32>
    %12 = arith.mulf %11, %10 : vector<8x128xf32>
    %13 = math.tanh %12 : vector<8x128xf32>
    %cst_7 = arith.constant 1.000000e+00 : f32
    %14 = vector.broadcast %cst_7 : f32 to vector<8x128xf32>
    %15 = arith.addf %14, %13 : vector<8x128xf32>
    %cst_8 = arith.constant 5.000000e-01 : f32
    %16 = vector.broadcast %cst_8 : f32 to vector<8x128xf32>
    %17 = arith.mulf %16, %15 : vector<8x128xf32>
    %18 = arith.mulf %5, %17 : vector<8x128xf32>
    %c0_9 = arith.constant 0 : index
    %c0_10 = arith.constant 0 : index
    %19 = vector.load %arg4[%c0_9, %c0_10] : memref<128x128xf32, #tpu.memory_space<vmem>>, vector<128x128xf32>
    %cst_11 = arith.constant dense<0.000000e+00> : vector<8x128xf32>
    %20 = tpu.matmul %18, %19, %cst_11 {dimension_numbers = #tpu.dot_dimension_numbers<[1], [0], [0], [1], [0, 0, 1, 1], [], []>} : vector<8x128xf32>, vector<128x128xf32>, vector<8x128xf32> -> vector<8x128xf32>
    %c0_12 = arith.constant 0 : index
    %c0_13 = arith.constant 0 : index
    %21 = vector.load %arg5[%c0_12, %c0_13] : memref<1x128xf32, #tpu.memory_space<vmem>>, vector<1x128xf32>
    %22 = vector.broadcast %21 : vector<1x128xf32> to vector<8x128xf32>
    %23 = arith.addf %20, %22 : vector<8x128xf32>
    %c0_14 = arith.constant 0 : index
    %c0_15 = arith.constant 0 : index
    %24 = vector.load %arg6[%c0_14, %c0_15] : memref<8x128xf32, #tpu.memory_space<vmem>>, vector<8x128xf32>
    tpu.vector_store %arg6[%c0_14, %c0_15], %23 {strides = array<i32>} : memref<8x128xf32, #tpu.memory_space<vmem>>, vector<8x128xf32>,
    return
  }
  func.func @transform_0(%arg0: i32) -> (i32, i32) {
    %c0_i32 = arith.constant 0 : i32
    %c0_i32_0 = arith.constant 0 : i32
    return %arg0, %c0_i32 : i32, i32
  }
  func.func @transform_1(%arg0: i32) -> (i32, i32) {
    %c0_i32 = arith.constant 0 : i32
    %c0_i32_0 = arith.constant 0 : i32
    %c0_i32_1 = arith.constant 0 : i32
    return %c0_i32, %c0_i32_0 : i32, i32
  }
  func.func @transform_2(%arg0: i32) -> (i32, i32) {
    %c0_i32 = arith.constant 0 : i32
    %c0_i32_0 = arith.constant 0 : i32
    %c0_i32_1 = arith.constant 0 : i32
    return %c0_i32, %c0_i32_0 : i32, i32
  }
  func.func @transform_3(%arg0: i32) -> (i32, i32) {
    %c0_i32 = arith.constant 0 : i32
    %c0_i32_0 = arith.constant 0 : i32
    %c0_i32_1 = arith.constant 0 : i32
    return %c0_i32, %c0_i32_0 : i32, i32
  }
  func.func @transform_4(%arg0: i32) -> (i32, i32) {
    %c0_i32 = arith.constant 0 : i32
    %c0_i32_0 = arith.constant 0 : i32
    %c0_i32_1 = arith.constant 0 : i32
    return %c0_i32, %c0_i32_0 : i32, i32
  }
  func.func @transform_5(%arg0: i32) -> (i32, i32) {
    %c0_i32 = arith.constant 0 : i32
    %c0_i32_0 = arith.constant 0 : i32
    return %arg0, %c0_i32 : i32, i32
  }
}

</mosaic_0001>

<bundles_post_ra>
// kernel: tpu_custom_call.1
= control target key start
LH: loop header
LB: loop body
LE: loop exit
PB: predicated region body
PF: predicated region fallthrough
CT: control target
= control target key end

     0   :  { %10 = vsyncpa [#allocation3], 0  ;;  %s1225_s0 = inlined_call_operand.hbm [shape: f32[16,64], index: 0, kind: input, shape index: {}]   ;;  %s1226_s1 = inlined_call_operand.hbm [shape: f32[64,128], index: 1, kind: input, shape index: {}]   ;;  %s1227_s2 = inlined_call_operand.vmem [shape: f32[1,128], index: 2, kind: input, shape index: {}]   ;;  %s1228_s3 = inlined_call_operand.hbm [shape: f32[128,128], index: 3, kind: input, shape index: {}]   ;;  %s1229_s4 = inlined_call_operand.vmem [shape: f32[1,128], index: 4, kind: input, shape index: {}]   ;;  %s1230_s5 = inlined_call_operand.hbm [shape: f32[16,128], index: 5, kind: output, shape index: {}]  }
   0x1   :  { %12 = vsyncpa [#allocation3 + $0x1], 0 }
   0x2   :  { %13 = vsyncpa [#allocation6], 0 }
   0x3   :  { %14 = vsyncpa [#allocation4], 0 }
   0x4   :  { %16 = vsyncpa [#allocation4 + $0x1], 0  ;;  %s971_s18 = smov 0   ;;  %s973_s19 = smov 0  }
   0x5   :  { %s975_s20 = smov 0   ;;  %s977_s21 = smov 0  }
   0x6 LB: > { %s992_s22 = sadd.s32 4294967295, %s930_s21   ;;  %s565_s23 = sadd.s32 4294967294, %s930_s21   ;;  %s930_s21 = sphi %s977_s21, %s1250_s21   ;;  %s926_s20 = sphi %s975_s20, %s1249_s20   ;;  %s922_s19 = sphi %s973_s19, %s1248_s19   ;;  %s918_s18 = sphi %s971_s18, %s1247_s18  }
   0x7   : > { %p42_p0 = scmp.ne.s32.totalorder %s922_s19, %s918_s18  ;;  %p1231_p1 = scmp.eq.s32.totalorder %s992_s22, 0 }
   0x8   : > { %p156_p3 = scmp.eq.s32.totalorder %s565_s23, 1  ;;  %p566_p5 = scmp.ge.s32.totalorder %s930_s21, 1 }
   0x9   : > { %p1001_p4 = por %p1231_p1, %p42_p0  ;;  %p163_p7 = scmp.lt.s32.totalorder %s930_s21, 3 }
   0xa   : > { %p1006_p6 = por %p156_p3, %p42_p0  ;;  %s932_s27 = smov [#allocation5]  }
   0xb   : > { %s1234_s24 = scalar_select %p1001_p4, 1, 0 }
   0xc   : > { %s1235_s25 = scalar_select %p1006_p6, 1, 0 }
   0xd   : > { %p1011_p8 = pnand %p566_p5, %p163_p7  ;;  %s175_s28 = sshll.u32 %s932_s27, 4  ;;  %s1015_s28 = int_to_ptr.vmem [resolvable:$true] %s175_s28 }
   0xe   : > { %s933_s30 = smov [#allocation7]   ;;  %s774_s9 = scalar_lea.hbm %s1226_s1, 1024 }
   0xf   : > { %p712_p9 = pneg %p1011_p8  ;;  %s191_s6 = sshll.u32 %s933_s30, 4  ;;  %s1026_s6 = int_to_ptr.vmem [resolvable:$true] %s191_s6 }
  0x10   : > { %p775_p12 = scmp.ne.s32.totalorder %s1226_s1, %s774_s9  ;;  %p781_p5 = scmp.lt.u32.totalorder %s774_s9, %s1226_s1 }
  0x11   : > { %p1022_p11 = pnand %p712_p9, %p1231_p1 }
  0x13   : > { %p776_p13 = pneg %p1022_p11 }
  0x15   : > { %p777_p0 = pnand %p776_p13, %p775_p12 }
  0x17   : > { %p778_p3 = pneg %p777_p0 }
  0x19   : > { %p783_p7 = pnand %p781_p5, %p778_p3 }
  0x1b   : > { %786 = shalt.err (!%p783_p7)
}
  0x1c   : > { %s787_s14 = scalar_lea.vmem %s1015_s28, 1024  ;;  %p795_p2 = scmp.lt.s32.totalorder %s1015_s28, %s1015_s28 }
  0x1d   : > { %p788_p9 = scmp.ne.s32.totalorder %s1015_s28, %s787_s14  ;;  %p796_p12 = scmp.lt.s32.totalorder %s787_s14, %s787_s14 }
  0x1f   : > { %p790_p10 = pnand %p788_p9, %p776_p13  ;;  %p797_p0 = por %p796_p12, %p795_p2 }
  0x21   : > { %p791_p1 = pneg %p790_p10 }
  0x23   : > { %p798_p6 = pnand %p797_p0, %p791_p1 }
  0x25   : > { %801 = shalt.err (!%p798_p6)
}
  0x26   : > { %s934_s15 = smov 128   ;;  %s935_s16 = smov 8  }
  0x27   : > { %715 = dma.hbm_to_vmem [thread:$0]  (!%p1022_p11), %s1226_s1, 1024, %s1015_s28, [#allocation6], %s934_s15, %s934_s15, %s935_s16  }
  0x28   : > { %s802_s7 = scalar_lea.hbm %s1228_s3, 2048 }
  0x29   : > { %p803_p2 = scmp.ne.s32.totalorder %s1228_s3, %s802_s7  ;;  %p809_p10 = scmp.lt.u32.totalorder %s802_s7, %s1228_s3 }
  0x2b   : > { %p805_p1 = pnand %p803_p2, %p776_p13 }
  0x2d   : > { %p806_p6 = pneg %p805_p1 }
  0x2f   : > { %p811_p3 = pnand %p809_p10, %p806_p6 }
  0x31   : > { %814 = shalt.err (!%p811_p3)
}
  0x32   : > { %s815_s28 = scalar_lea.vmem %s1026_s6, 2048  ;;  %p823_p12 = scmp.lt.s32.totalorder %s1026_s6, %s1026_s6 }
  0x33   : > { %p816_p5 = scmp.ne.s32.totalorder %s1026_s6, %s815_s28  ;;  %p824_p0 = scmp.lt.s32.totalorder %s815_s28, %s815_s28 }
  0x35   : > { %p818_p7 = pnand %p816_p5, %p776_p13  ;;  %p825_p2 = por %p824_p0, %p823_p12 }
  0x37   : > { %p819_p9 = pneg %p818_p7 }
  0x39   : > { %p826_p1 = pnand %p825_p2, %p819_p9 }
  0x3b   : > { %829 = shalt.err (!%p826_p1)
}
  0x3c   : > { %718 = dma.hbm_to_vmem [thread:$0]  (!%p1022_p11), %s1228_s3, 2048, %s1026_s6, [#allocation6], %s934_s15, %s934_s15, %s935_s16  }
  0x3d   : > { %s1081_s14 = sadd.s32 1, %s930_s21   ;;  %s29_s29 = sadd.s32 1, %s926_s20 }
  0x3e   : > { %s26_s17 = ssub.s32 %s930_s21, %s1081_s14  ;;  %p36_p13 = scmp.ne.s32.totalorder %s926_s20, %s922_s19 }
  0x3f   : > { %p27_p6 = scmp.eq.s32.totalorder %s26_s17, 0  ;;  %p37_p10 = scmp.eq.s32.totalorder %s930_s21, 0 }
  0x40   : > { %p1238_p3 = scmp.eq.s32.totalorder %s992_s22, 1  ;;  %p729_p7 = scmp.lt.s32.totalorder %s930_s21, 2 }
  0x41   : > { %s1097_s27 = scalar_select %p27_p6, %s926_s20, %s29_s29  }
  0x42   : > { %p1091_p5 = por %p1238_p3, %p36_p13  ;;  %p38_p9 = por %p37_p10, %p36_p13 }
  0x43   : > { %s208_s30 = sand.u32 1, %s926_s20   ;;  %s571_s6 = sshll.u32 %s930_s21, 7 }
  0x44   : > { %s1239_s23 = scalar_select %p1091_p5, 1, 0 }
  0x45   : > { %s570_s7 = sshll.u32 %s208_s30, 3  ;;  %s1104_s8 = scalar_lea.hbm %s1225_s0, %s571_s6 }
  0x46   : > { %s212_s9 = scalar_lea.vmem [#allocation2], %s570_s7  ;;  %p1108_p11 = pnand %p729_p7, %p38_p9 }
  0x47   : > { %s219_s10 = sshll.u32 %s212_s9, 4  ;;  %s209_s28 = scalar_lea.sflag [#allocation3], %s208_s30  ;;  %s1106_s10 = int_to_ptr.vmem [resolvable:$true] %s219_s10 }
  0x48   : > { %s830_s12 = scalar_lea.hbm %s1104_s8, 128  ;;  %p832_p0 = pneg %p1108_p11 }
  0x49   : > { %p831_p12 = scmp.ne.s32.totalorder %s1104_s8, %s830_s12  ;;  %s835_s17 = scalar_lea.hbm %s1225_s0, 256 }
  0x4a   : > { %p836_p13 = scmp.lt.u32.totalorder %s1104_s8, %s1225_s0  ;;  %p837_p6 = scmp.lt.u32.totalorder %s835_s17, %s830_s12 }
  0x4b   : > { %p833_p2 = pnand %p832_p0, %p831_p12  ;;  %p839_p3 = scmp.lt.u32.totalorder %s830_s12, %s1104_s8 }
  0x4c   : > { %p838_p10 = por %p837_p6, %p836_p13 }
  0x4d   : > { %p834_p1 = pneg %p833_p2 }
  0x4e   : > { %p840_p7 = por %p839_p3, %p838_p10 }
  0x50   : > { %p841_p9 = pnand %p840_p7, %p834_p1 }
  0x52   : > { %844 = shalt.err (!%p841_p9)
}
  0x53   : > { %s845_s30 = scalar_lea.vmem %s1106_s10, 128  ;;  %s936_s15 = smov [#allocation2]  }
  0x54   : > { %p846_p12 = scmp.ne.s32.totalorder %s1106_s10, %s845_s30  ;;  %s850_s16 = sshll.u32 %s936_s15, 4  ;;  %s851_s16 = int_to_ptr.vmem [resolvable:$false] %s850_s16 }
  0x55   : > { %s852_s9 = scalar_lea.vmem %s851_s16, 256  ;;  %p853_p4 = scmp.lt.s32.totalorder %s1106_s10, %s851_s16 }
  0x56   : > { %p848_p2 = pnand %p846_p12, %p832_p0  ;;  %p854_p13 = scmp.lt.s32.totalorder %s852_s9, %s845_s30 }
  0x58   : > { %p849_p5 = pneg %p848_p2  ;;  %p855_p6 = por %p854_p13, %p853_p4 }
  0x5a   : > { %p856_p10 = pnand %p855_p6, %p849_p5 }
  0x5c   : > { %859 = shalt.err (!%p856_p10)
}
  0x5d   : > { %722 = dma.hbm_to_vmem [thread:$0]  (!%p1108_p11), %s1104_s8, 128, %s1106_s10, %s209_s28  }
  0x5e   : > { %228 = sbr.rel (%p1011_p8) target bundleno = 592 (0x250), region = 40  ;;  %s1140_s12 = sand.u32 (!%p1011_p8), 1, %s922_s19  }
  0x5f   : > { %s573_s13 = sshll.u32 (!%p1011_p8), %s1140_s12, 3  ;;  %s231_s29 = scalar_lea.sflag (!%p1011_p8), [#allocation3], %s1140_s12 }
  0x60   : > { %s1146_s17 = scalar_lea.vmem (!%p1011_p8), [#allocation2], %s573_s13  ;;  %p1241_p4 = scmp.ne.s32.totalorder (!%p1011_p8), %s1234_s24, 0 }
  0x65   : > { %905 = dma.done.wait (%p1241_p4), %s231_s29, 128  }
  0x66   : > { %907 = vsyncadd (%p1241_p4), %s231_s29, 4294967168  ;;  %p1242_p5 = scmp.eq.s32.totalorder %s992_s22, 0 }
  0x68   : > { %909 = dma.done.wait (%p1242_p5), [#allocation6], 3072   ;;  %p1243_p8 = pmov %p1242_p5 }
  0x69   : > { %v937_v0 = vmov 0.0|0.0   ;;  %vm938_vm0 = vmmov 0   ;;  %v939_v1 = vmov 0.0   ;;  %v270_v2 = vld [vmem:[#allocation5] sm:$0xff]  ;;  %v271_v3 = vld [vmem:[#allocation5 + $0x8] sm:$0xff]  ;;  %v272_v4 = vld [vmem:[#allocation5 + $0x10] sm:$0xff] }
  0x6a   : > { %911 = vsyncadd (%p1243_p8), [#allocation6], 4294964224  ;;  %664 = vmatprep.subr.bf16.mxu0 %v937_v0  ;;  %626 = vmatprep.mubr.msk.f32.mxu0 %vm938_vm0, %v939_v1  ;;  %v665_v5 = vpack.c.bf16 %v271_v3, %v270_v2  ;;  %v273_v6 = vld [vmem:[#allocation5 + $0x18] sm:$0xff]  ;;  %v368_v8 = vld [vmem:[#allocation7] sm:$0xff]  ;;  %vm285_vm1 = vcmask 523264   ;;  %s581_s11 = sshll.u32 %s992_s22, 7 }
  0x6b   : > { %676 = vmatprep.subr.bf16.mxu1 %v937_v0  ;;  %661 = vmatprep.mubr.msk.f32.mxu1 %vm938_vm0, %v939_v1  ;;  %v668_v7 = vpack.c.bf16 %v273_v6, %v272_v4  ;;  %v369_v9 = vld [vmem:[#allocation7 + $0x8] sm:$0xff]  ;;  %v274_v10 = vld [vmem:[#allocation5 + $0x20] sm:$0xff]  ;;  %v276_v14 = vld [vmem:[#allocation5 + $0x30] sm:$0xff]  ;;  %s268_s28 = scalar_lea.vmem [#allocation8], %s573_s13  ;;  %s1181_s15 = scalar_lea.hbm %s1230_s5, %s581_s11 }
  0x6c   : > { %666 = vmatpush3.bf16.msra.mxu0 %v665_v5  ;;  %v275_v11 = vld [vmem:[#allocation5 + $0x28] sm:$0xff]  ;;  %v677_v12 = vpack.c.bf16 %v369_v9, %v368_v8  ;;  %v277_v15 = vld [vmem:[#allocation5 + $0x38] sm:$0xff]  ;;  %v370_v18 = vld [vmem:[#allocation7 + $0x10] sm:$0xff]  ;;  %s476_s7 = sshll.u32 %s268_s28, 4  ;;  %s463_s16 = scalar_lea.sflag [#allocation4], %s1140_s12  ;;  %s1183_s7 = int_to_ptr.vmem [resolvable:$true] %s476_s7 }
  0x6d   : > { %667 = vmatprep.subr.bf16.mxu0 %v937_v0  ;;  %v671_v13 = vpack.c.bf16 %v275_v11, %v274_v10  ;;  %v674_v16 = vpack.c.bf16 %v277_v15, %v276_v14  ;;  %v269_v17 = vld [vmem:[%s1146_s17] sm:$0xff]  ;;  %v372_v21 = vld [vmem:[#allocation7 + $0x20] sm:$0xff]  ;;  %v373_v22 = vld [vmem:[#allocation7 + $0x28] sm:$0xff]  ;;  %s860_s9 = scalar_lea.vmem %s1183_s7, 128  ;;  %p1244_p0 = scmp.ne.s32.totalorder %s1239_s23, 0 }
  0x6e   : > { %678 = vmatpush3.bf16.msra.mxu1 %v677_v12  ;;  %v371_v19 = vld [vmem:[#allocation7 + $0x18] sm:$0xff]  ;;  %v683_v23 = vpack.c.bf16 %v373_v22, %v372_v21  ;;  %v374_v24 = vld [vmem:[#allocation7 + $0x30] sm:$0xff]  ;;  %v376_v27 = vld [vmem:[#allocation7 + $0x40] sm:$0xff]  ;;  %p861_p11 = scmp.ne.s32.totalorder %s1183_s7, %s860_s9  ;;  %s940_s22 = smov [#allocation8]  }
  0x6f   : > { %679 = vmatprep.subr.bf16.mxu1 %v937_v0  ;;  %v680_v20 = vpack.c.bf16 %v371_v19, %v370_v18  ;;  %v375_v25 = vld [vmem:[#allocation7 + $0x38] sm:$0xff]  ;;  %v377_v28 = vld [vmem:[#allocation7 + $0x48] sm:$0xff]  ;;  %v378_v30 = vld [vmem:[#allocation7 + $0x50] sm:$0xff]  ;;  %s864_s13 = sshll.u32 %s940_s22, 4  ;;  %s865_s13 = int_to_ptr.vmem [resolvable:$false] %s864_s13 }
  0x70   : > { %669 = vmatpush3.bf16.msra.mxu0 %v668_v7  ;;  %v686_v26 = vpack.c.bf16 %v375_v25, %v374_v24  ;;  %v689_v29 = vpack.c.bf16 %v377_v28, %v376_v27  ;;  %v379_v31 = vld [vmem:[#allocation7 + $0x58] sm:$0xff]  ;;  %v380_v33 = vld [vmem:[#allocation7 + $0x60] sm:$0xff]  ;;  %v381_v34 = vld [vmem:[#allocation7 + $0x68] sm:$0xff]  ;;  %p862_p1 = pnand %p861_p11, %p1244_p0  ;;  %s866_s29 = scalar_lea.vmem %s865_s13, 256 }
  0x71   : > { %670 = vmatprep.subr.bf16.mxu0 %v937_v0  ;;  %v692_v32 = vpack.c.bf16 %v379_v31, %v378_v30  ;;  %v695_v35 = vpack.c.bf16 %v381_v34, %v380_v33  ;;  %v382_v36 = vld [vmem:[#allocation7 + $0x70] sm:$0xff]  ;;  %v383_v37 = vld [vmem:[#allocation7 + $0x78] sm:$0xff]  ;;  %p867_p7 = scmp.lt.s32.totalorder %s1183_s7, %s865_s13  ;;  %p868_p9 = scmp.lt.s32.totalorder %s866_s29, %s860_s9 }
  0x72   : > { %681 = vmatpush3.bf16.msra.mxu1 %v680_v20  ;;  %v698_v38 = vpack.c.bf16 %v383_v37, %v382_v36  ;;  %v577_v39 = vld [vmem:[%s1227_s2] ss:$0 sm:$0xff]  ;;  %p863_p3 = pneg %p862_p1 }
  0x73   : > { %682 = vmatprep.subr.bf16.mxu1 %v937_v0  ;;  %v579_v52 = vld [vmem:[%s1229_s4] ss:$0 sm:$0xff]  ;;  %p869_p12 = por %p868_p9, %p867_p7 }
  0x74   : > { %672 = vmatpush3.bf16.msra.mxu0 %v671_v13 }
  0x75   : > { %673 = vmatprep.subr.bf16.mxu0 %v937_v0  ;;  %p870_p2 = pnand %p869_p12, %p863_p3 }
  0x76   : > { %684 = vmatpush3.bf16.msra.mxu1 %v683_v23 }
  0x77   : > { %685 = vmatprep.subr.bf16.mxu1 %v937_v0 }
  0x78   : > { %675 = vmatpush3.bf16.msra.mxu0 %v674_v16 }
  0x7a   : > { %687 = vmatpush3.bf16.msra.mxu1 %v686_v26 }
  0x7b   : > { %627 = vmatmul.mubr.msk.f32.vlgmr.msra.gmra.mrb[0].mxu0 %vm285_vm1, %v269_v17  ;;  %688 = vmatprep.subr.bf16.mxu1 %v937_v0 }
  0x7e   : > { %690 = vmatpush3.bf16.msra.mxu1 %v689_v29 }
  0x7f   : > { %691 = vmatprep.subr.bf16.mxu1 %v937_v0 }
  0x82   : > { %693 = vmatpush3.bf16.msra.mxu1 %v692_v32 }
  0x83   : > { %694 = vmatprep.subr.bf16.mxu1 %v937_v0 }
  0x86   : > { %696 = vmatpush3.bf16.msra.mxu1 %v695_v35 }
  0x87   : > { %697 = vmatprep.subr.bf16.mxu1 %v937_v0 }
  0x8a   : > { %699 = vmatpush3.bf16.msra.mxu1 %v698_v38 }
 0x14e   : > { %v355_v40 = vpop.f32.mrb[0].mxu0 }
 0x14f   : > { %v356_v41 = vadd.f32 %v577_v39, %v355_v40  ;;  %v628_v42 = vpop.f32.mrb[1].mxu0 }
 0x151   : > { %v359_v43 = vmul.f32 %v356_v41, %v356_v41 }
 0x153   : > { %v360_v44 = vmul.f32 %v359_v43, %v356_v41 }
 0x155   : > { %v361_v45 = vmul.f32 0.044715, %v360_v44 }
 0x157   : > { %v362_v46 = vadd.f32 %v361_v45, %v356_v41 }
 0x159   : > { %v363_v47 = vmul.f32 0.7978846, %v362_v46 }
 0x15b   : > { %772 = vtanh.f32 %v363_v47 }
 0x165   : > { %v773_v48 = vpop.eup %772 }
 0x166   : > { %v365_v49 = vadd.f32 1.0, %v773_v48 }
 0x168   : > { %v366_v50 = vmul.f32 0.5, %v365_v49 }
 0x16a   : > { %v367_v51 = vmul.f32 %v366_v50, %v356_v41 }
 0x16c   : > { %662 = vmatmul.mubr.f32.vlgmr.msra.gmra.mrb[0].mxu1 %v367_v51 }
 0x23f   : > { %v457_v53 = vpop.f32.mrb[0].mxu1 }
 0x240   : > { %v458_v54 = vadd.f32 %v579_v52, %v457_v53  ;;  %v663_v55 = vpop.f32.mrb[1].mxu1 }
 0x242   : > { %461 = vst [vmem:[%s268_s28] sm:$0xff] %v458_v54 }
 0x243   : > { %873 = shalt.err (!%p870_p2)
}
 0x244   : > { %s874_s12 = scalar_lea.hbm %s1181_s15, 128  ;;  %s878_s26 = scalar_lea.hbm %s1230_s5, 256 }
 0x245   : > { %p875_p13 = scmp.ne.s32.totalorder %s1181_s15, %s874_s12  ;;  %p879_p4 = scmp.lt.u32.totalorder %s1181_s15, %s1230_s5 }
 0x246   : > { %p880_p5 = scmp.lt.u32.totalorder %s878_s26, %s874_s12  ;;  %p882_p11 = scmp.lt.u32.totalorder %s874_s12, %s1181_s15 }
 0x247   : > { %p876_p6 = pnand %p875_p13, %p1244_p0 }
 0x248   : > { %p881_p8 = por %p880_p5, %p879_p4 }
 0x249   : > { %p877_p10 = pneg %p876_p6 }
 0x24a   : > { %p883_p1 = por %p882_p11, %p881_p8 }
 0x24c   : > { %p884_p3 = pnand %p883_p1, %p877_p10 }
 0x24e   : > { %887 = shalt.err (!%p884_p3)
}
 0x24f   : > { %710 = dma.vmem_to_hbm [thread:$0]  (%p1244_p0), %s1183_s7, 128, %s1181_s15, %s463_s16  }
 0x250 PF: > { %s488_s11 = sand.u32 1, %s918_s18   ;;  %p1245_p7 = scmp.ne.s32.totalorder %s1235_s25, 0 }
 0x251   : > { %p1246_p9 = scmp.ge.s32.totalorder %s930_s21, 2  ;;  %s489_s28 = scalar_lea.sflag [#allocation4], %s488_s11 }
 0x253   : > { %p724_p12 = pnand %p1246_p9, %p1245_p7 }
 0x255   : > { %913 = dma.done.wait (!%p724_p12), %s489_s28, 128  }
 0x256   : > { %915 = vsyncadd (!%p724_p12), %s489_s28, 4294967168  ;;  %p19_p2 = scmp.ge.s32.totalorder %s1081_s14, 4   ;;  %s1247_s18 = smov %s922_s19 }
 0x257   : > { %s1248_s19 = smov %s926_s20  ;;  %s1249_s20 = smov %s1097_s27 }
 0x258   : > { %s1250_s21 = smov %s1081_s14  ;;  %21 = sbr.rel (!%p19_p2) target bundleno = 6 (0x6), region = 93 }
 0x25f   :  { %494 = vsyncpa [#allocation3], 1 }
 0x260   :  { %496 = vsyncpa [#allocation3 + $0x1], 1 }
 0x261   :  { %497 = vsyncpa [#allocation6], 1 }
 0x262   :  { %498 = vsyncpa [#allocation4], 1 }
 0x263   :  { %500 = vsyncpa [#allocation4 + $0x1], 1 }

</bundles_post_ra>
